<compile_context>
chip_gen: v7x
topology: tpu7x:2x2x1
jax: 0.10.0
libtpu: 0.0.40
codegen_flags: <defaults>
</compile_context>

<pallas_src>
import math

import jax
import jax.numpy as jnp
from jax.experimental import pallas as pl
from jax.experimental.pallas import tpu as pltpu


# ---- packed-parameter slab layout (rows x 128 lanes, f32) -------------------
_LANES = 128
_ALFA_ROW = 0            # lanes [0:4] = alfa, lane 4 = 1.0 (bias multiplier)
_B2_ROW = 1              # lanes [0:out_dim] = b2
_W1T_START = 8           # rows [8:8+hidden): W1^T, lanes [0:4]; lane 4 = b1
_W1T_ROWS = 16
_W2_START = 24           # rows [24:24+hidden): W2, lanes [0:out_dim]
_W2_ROWS = 16
_PACK_ROWS = 40          # multiple of 8; total slab = 40*128*4 B = 20 KiB


def _mlp_kernel(pack_ref, out_ref):
    # Static, tile-aligned views into the single packed VMEM operand.
    alfa_row = pack_ref[_ALFA_ROW:_ALFA_ROW + 1, :]        # (1, 128)
    b2_row = pack_ref[_B2_ROW:_B2_ROW + 1, :]              # (1, 128)
    w1t = pack_ref[_W1T_START:_W1T_START + _W1T_ROWS, :]   # (16, 128)
    w2 = pack_ref[_W2_START:_W2_START + _W2_ROWS, :]       # (16, 128)

    # Layer 1 (VPU mul + XLU lane-reduction; bias picked up by the 1.0 lane):
    #   h[j] = tanh( sum_k alfa[k] * W1[k, j] + b1[j] )      -> (16, 1)
    h = jnp.tanh(jnp.sum(alfa_row * w1t, axis=1, keepdims=True))

    # Layer 2 (lane-broadcast of h, sublane reduction):
    #   y[o] = tanh( sum_j h[j] * W2[j, o] + b2[o] )          -> (1, 128)
    y = jnp.tanh(jnp.sum(h * w2, axis=0, keepdims=True) + b2_row)

    out_ref[...] = y.astype(out_ref.dtype)


def _pack_params(alfa, w1, b1, w2, b2):
    """Pack all parameters into one zero-padded (40, 128) f32 slab."""
    in_dim, hidden = w1.shape
    out_dim = w2.shape[1]
    assert in_dim + 1 <= _LANES and out_dim <= _LANES and hidden <= _W1T_ROWS

    pack = jnp.zeros((_PACK_ROWS, _LANES), jnp.float32)
    pack = pack.at[_ALFA_ROW, :in_dim].set(alfa.reshape(in_dim).astype(jnp.float32))
    pack = pack.at[_ALFA_ROW, in_dim].set(1.0)                     # bias multiplier
    pack = pack.at[_B2_ROW, :out_dim].set(b2.reshape(out_dim).astype(jnp.float32))
    pack = pack.at[_W1T_START:_W1T_START + hidden, :in_dim].set(
        w1.T.astype(jnp.float32))
    pack = pack.at[_W1T_START:_W1T_START + hidden, in_dim].set(
        b1.reshape(hidden).astype(jnp.float32))
    pack = pack.at[_W2_START:_W2_START + hidden, :out_dim].set(
        w2.astype(jnp.float32))
    return pack


@jax.jit
def model1_theta(alfa, w1, b1, w2, b2):
    """Theta vector produced by Model1's classical head, shape (nq*nl,)."""
    out_dim = w2.shape[1]
    pack = _pack_params(alfa, w1, b1, w2, b2)
    out = pl.pallas_call(
        _mlp_kernel,
        out_shape=jax.ShapeDtypeStruct((1, _LANES), jnp.float32),
        # No grid: single whole-array VMEM block in, lane-dense (1,128) out.
        in_specs=[pl.BlockSpec(memory_space=pltpu.VMEM)],
        out_specs=pl.BlockSpec(memory_space=pltpu.VMEM),
    )(pack)
    return out[0, :out_dim]


def model1_forward(x, params):
    """Model1.forward equivalent (minus file I/O and the quantum node).

    x is carried through for interface parity with the torch module; the
    classical head does not depend on it.
    """
    theta = model1_theta(*params)
    # TODO(synk): qlayer(x, theta) is an external quantum circuit (PennyLane
    # qnode) with no Pallas equivalent; returning theta (the circuit angles).
    # TODO(synk): os.mkdir / np.savetxt / epoch counter side-effects omitted.
    return theta


def init_params(key, nq, nl):
    """Deterministic parameter init matching the shapes in Model1.__init__."""
    k_alfa, k_w1, k_b1, k_w2, k_b2 = jax.random.split(key, 5)
    # alfa ~ U(0, 2*pi), shape (1, 4)
    alfa = jax.random.uniform(k_alfa, (1, 4), jnp.float32, 0.0, 2.0 * math.pi)
    # nn.Linear(4, 10): weight (10, 4) used here transposed to (in, out)
    lim1 = 1.0 / math.sqrt(4.0)
    w1 = jax.random.uniform(k_w1, (4, 10), jnp.float32, -lim1, lim1)
    b1 = jax.random.uniform(k_b1, (1, 10), jnp.float32, -lim1, lim1)
    # nn.Linear(10, nq*nl): bounds 1/sqrt(10)
    lim2 = 1.0 / math.sqrt(10.0)
    w2 = jax.random.uniform(k_w2, (10, nq * nl), jnp.float32, -lim2, lim2)
    b2 = jax.random.uniform(k_b2, (1, nq * nl), jnp.float32, -lim2, lim2)
    return alfa, w1, b1, w2, b2


if __name__ == "__main__":
    nq, nl = 4, 3  # small synthetic config -> theta has nq*nl = 12 entries
    key = jax.random.PRNGKey(0)
    k_params, k_x = jax.random.split(key)

    params = init_params(k_params, nq, nl)
    # Example circuit input (passed to qlayer in the torch module); unused by
    # the classical head but constructed for interface parity.
    x = jax.random.uniform(k_x, (2, nq), jnp.float32)

    theta = model1_forward(x, params)
    theta = jax.block_until_ready(theta)

    # Cross-check against plain-JAX reference of the same math.
    alfa, w1, b1, w2, b2 = params
    ref = jnp.tanh(jnp.tanh(alfa @ w1 + b1) @ w2 + b2).reshape(nq * nl)
    assert theta.shape == (nq * nl,)
    assert jnp.allclose(theta, ref, atol=1e-5), "mismatch vs reference"

    print("KERNEL_OK")
</pallas_src>

<mosaic_0001>
module attributes {stable_mosaic.version = 11 : i64} {
  func.func @_mlp_kernel(%arg0: memref<40x128xf32, #tpu.memory_space<vmem>>, %arg1: memref<1x128xf32, #tpu.memory_space<vmem>>) attributes {dimension_semantics = [], scalar_prefetch = 0 : i64, scratch_operands = 0 : i64, tpu.core_type = #tpu.core_type<tc>} {
    %c0 = arith.constant 0 : index
    %c0_0 = arith.constant 0 : index
    %0 = vector.load %arg0[%c0, %c0_0] : memref<40x128xf32, #tpu.memory_space<vmem>>, vector<1x128xf32>
    %c1 = arith.constant 1 : index
    %c0_1 = arith.constant 0 : index
    %1 = vector.load %arg0[%c1, %c0_1] : memref<40x128xf32, #tpu.memory_space<vmem>>, vector<1x128xf32>
    %c8 = arith.constant 8 : index
    %c0_2 = arith.constant 0 : index
    %2 = vector.load %arg0[%c8, %c0_2] : memref<40x128xf32, #tpu.memory_space<vmem>>, vector<16x128xf32>
    %c24 = arith.constant 24 : index
    %c0_3 = arith.constant 0 : index
    %3 = vector.load %arg0[%c24, %c0_3] : memref<40x128xf32, #tpu.memory_space<vmem>>, vector<16x128xf32>
    %4 = vector.broadcast %0 : vector<1x128xf32> to vector<16x128xf32>
    %5 = arith.mulf %4, %2 : vector<16x128xf32>
    %cst = arith.constant dense<0.000000e+00> : vector<16xf32>
    %6 = vector.multi_reduction <add>, %5, %cst [1] : vector<16x128xf32> to vector<16xf32>
    %7 = vector.shape_cast %6 : vector<16xf32> to vector<16x1xf32>
    %8 = math.tanh %7 : vector<16x1xf32>
    %9 = vector.broadcast %8 : vector<16x1xf32> to vector<16x128xf32>
    %10 = arith.mulf %9, %3 : vector<16x128xf32>
    %cst_4 = arith.constant dense<0.000000e+00> : vector<128xf32>
    %11 = vector.multi_reduction <add>, %10, %cst_4 [0] : vector<16x128xf32> to vector<128xf32>
    %12 = vector.shape_cast %11 : vector<128xf32> to vector<1x128xf32>
    %13 = arith.addf %12, %1 : vector<1x128xf32>
    %14 = math.tanh %13 : vector<1x128xf32>
    %c0_5 = arith.constant 0 : index
    %c0_6 = arith.constant 0 : index
    %15 = vector.load %arg1[%c0_5, %c0_6] : memref<1x128xf32, #tpu.memory_space<vmem>>, vector<1x128xf32>
    tpu.vector_store %arg1[%c0_5, %c0_6], %14 {strides = array<i32>} : memref<1x128xf32, #tpu.memory_space<vmem>>, vector<1x128xf32>,
    return
  }
}

</mosaic_0001>

<bundles_post_ra>
// kernel: model1_theta.1
= control target key start
LH: loop header
LB: loop body
LE: loop exit
PB: predicated region body
PF: predicated region fallthrough
CT: control target
= control target key end

     0   :  { %s80_s0 = inlined_call_operand.vmem [shape: f32[40,128], index: 0, kind: input, shape index: {}]   ;;  %s81_s1 = inlined_call_operand.vmem [shape: f32[1,128], index: 1, kind: output, shape index: {}]  }
   0x1   :  { %v42_v0 = vld [vmem:[%s80_s0] ss:$0 sm:$0xff]  ;;  %v10_v1 = vld [vmem:[%s80_s0 + $0x8] sm:$0xff]  ;;  %v11_v3 = vld [vmem:[%s80_s0 + $0x10] sm:$0xff] }
   0x2   :  { %v18_v2 = vmul.f32 %v42_v0, %v10_v1  ;;  %v19_v4 = vmul.f32 %v42_v0, %v11_v3  ;;  %v12_v8 = vld [vmem:[%s80_s0 + $0x18] sm:$0xff]  ;;  %v13_v9 = vld [vmem:[%s80_s0 + $0x20] sm:$0xff] }
   0x3   :  { %v9_v19 = vld [vmem:[%s80_s0 + $0x1] sm:$0x1] }
   0x4   :  { %20 = vadd.xlane.f32.xlu0 %v18_v2 }
   0x8   :  { %22 = vadd.xlane.f32.xlu0 %v19_v4 }
  0x91   :  { %v21_v5 = vpop.xlane.xlu0 %20 }
  0x92   :  { %43 = vtanh.f32 %v21_v5 }
  0x95   :  { %v23_v6 = vpop.xlane.xlu0 %22 }
  0x96   :  { %45 = vtanh.f32 %v23_v6 }
  0x9c   :  { %v44_v7 = vpop.eup %43 }
  0x9d   :  { %v26_v11 = vmul.f32 %v44_v7, %v12_v8 }
  0xa0   :  { %v46_v10 = vpop.eup %45 }
  0xa1   :  { %v27_v12 = vmul.f32 %v46_v10, %v13_v9 }
  0xa3   :  { %v28_v13 = vadd.f32 %v27_v12, %v26_v11 }
  0xa5   :  { %v29_v14 = vrot.slane %v28_v13, 4 }
  0xa7   :  { %v30_v15 = vadd.f32 %v29_v14, %v28_v13 }
  0xa9   :  { %v31_v16 = vrot.slane %v30_v15, 2 }
  0xab   :  { %v32_v17 = vadd.f32 %v31_v16, %v30_v15 }
  0xad   :  { %v33_v18 = vrot.slane %v32_v17, 1 }
  0xaf   :  { %v34_v20 = vadd.f32 %v33_v18, %v32_v17 }
  0xb1   :  { %v35_v21 = vadd.f32 %v34_v20, %v9_v19 }
  0xb3   :  { %47 = vtanh.f32 %v35_v21 }
  0xbd   :  { %v48_v22 = vpop.eup %47 }
  0xbe   :  { %37 = vst [vmem:[%s81_s1] sm:$0x1] %v48_v22 }

</bundles_post_ra>
